<compile_context>
chip_gen: v7x
topology: tpu7x:2x2x1
jax: 0.10.0
libtpu: 0.0.40
codegen_flags: <defaults>
</compile_context>

<pallas_src>
import numpy as np
import jax
import jax.numpy as jnp
from jax import lax
from jax.experimental import pallas as pl
from jax.experimental.pallas import tpu as pltpu

WINDOW_SIZE = 11
SIGMA = 1.5
C1 = 0.01 ** 2
C2 = 0.03 ** 2


def _gaussian_1d_np(window_size: int, sigma: float) -> np.ndarray:
    # Same as SSIMLoss.gaussian: exp(-(x - ws//2)^2 / (2*sigma^2)), normalized.
    x = np.arange(window_size, dtype=np.float64)
    g = np.exp(-((x - window_size // 2) ** 2) / (2.0 * sigma ** 2))
    return (g / g.sum()).astype(np.float32)


def _banded_blockdiag(n: int, copies: int, window_size: int = WINDOW_SIZE,
                      sigma: float = SIGMA) -> jnp.ndarray:
    """Block-diagonal matrix of `copies` identical (n, n) banded Gaussian blocks.

    band[r, c] = g[r - c + pad] for |r - c| <= pad.  'same' zero-padded 1-D
    Gaussian conv along the last axis of x is `x @ band`; along the
    second-to-last axis it is `band @ x` (band clipping == zero padding).
    The block-diagonal structure keeps independently packed channels /
    quantities from bleeding into each other.
    """
    g = _gaussian_1d_np(window_size, sigma)
    pad = window_size // 2
    band = np.zeros((n, n), dtype=np.float32)
    for r in range(n):
        for c in range(max(0, r - pad), min(n, r + pad + 1)):
            band[r, c] = g[r - c + pad]
    m = np.zeros((n * copies, n * copies), dtype=np.float32)
    for k in range(copies):
        m[k * n:(k + 1) * n, k * n:(k + 1) * n] = band
    return jnp.asarray(m)


def _vmem_budget():
    """Generation-aware (vmem_limit_bytes, per-step block budget) in bytes."""
    try:
        cap = int(pltpu.get_tpu_info().vmem_capacity_bytes)
    except Exception:
        cap = 64 * 1024 * 1024          # conservative (v7x-sized) fallback
    # v7x (64 MiB physical): limit 48 MiB, budget ~29 MiB.
    # v5e/v6e (128 MiB physical): limit 96 MiB, budget ~58 MiB.
    limit = max(32 * 1024 * 1024, min(cap * 3 // 4, 100 * 1024 * 1024))
    budget = limit * 3 // 5
    return limit, budget


def _pick_packing(bc: int, w: int) -> int:
    """Channels packed per lane-row: largest divisor P of bc with P*w <= 128.

    If full packing would collapse the grid to a single packed group, trade at
    most 2x lane occupancy to keep >= 2 groups so the 'parallel' grid axis can
    shard over both v7x TensorCores (nearly free on single-TC chips).
    """
    if w >= 128:
        return 1
    divs = [d for d in range(1, bc + 1) if bc % d == 0 and d * w <= 128]
    p_full = max(divs)
    multi = [d for d in divs if bc // d >= 2]
    if multi:
        p_multi = max(multi)
        if 2 * p_multi >= p_full:
            return p_multi
    return p_full


def _pick_groups_per_block(G: int, h: int, wp: int, budget: int,
                           fixed_bytes: int) -> int:
    """Packed groups per grid step sized from the real VMEM budget (no hard cap)."""
    stream_per_group = 2 * 2 * h * wp * 4   # x1 + x2, double-buffered by Pallas
    live_bytes = 32 * h * wp * 4            # loop-local per-group f32 intermediates
    avail = max(budget - fixed_bytes - live_bytes, stream_per_group)
    cap = max(1, avail // stream_per_group)
    divs = [d for d in range(1, G + 1) if G % d == 0 and d <= cap]
    best = max(divs)
    # Prefer an even number (>= 2) of grid steps when it costs at most 2x block
    # size, so megacore sharding on v7x keeps both cores busy.
    even = [d for d in divs if (G // d) % 2 == 0]
    if even:
        d_even = max(even)
        if 2 * d_even >= best:
            best = d_even
    return best


def _make_ssim_kernel(g_blk: int, H: int, Wp: int, slab_w: int,
                      fold_rows: bool, fold_lanes: bool):
    inv_slab = 1.0 / float(8 * slab_w)

    def kernel(mw_ref, mh5_ref, x1_ref, x2_ref, psum_ref):
        # mw_ref : (Wp, Wp)   block-diag horizontal Gaussian band (resident)
        # mh5_ref: (5H, 5H)   block-diag vertical Gaussian band, x5 quantities
        # x1_ref : (g_blk, H, Wp) lane-packed img1 groups
        # x2_ref : (g_blk, H, Wp) lane-packed img2 groups
        # psum_ref: (1, 8, slab_w) partial-sum slab for this grid step
        mw = mw_ref[...]
        mh5 = mh5_ref[...]

        def one_group(g):
            a = x1_ref[g]                     # (H, Wp): P channels in lanes
            b = x2_ref[g]
            # Row-stack the 5 quantities so the whole separable Gaussian
            # "same" conv for this group is exactly two MXU matmuls.
            s = jnp.concatenate([a, b, a * a, b * b, a * b], axis=0)  # (5H, Wp)
            h = jnp.dot(s, mw, preferred_element_type=jnp.float32)    # horizontal
            v = jnp.dot(mh5, h, preferred_element_type=jnp.float32)   # vertical
            mu1 = v[0:H]
            mu2 = v[H:2 * H]
            e11 = v[2 * H:3 * H]
            e22 = v[3 * H:4 * H]
            e12 = v[4 * H:5 * H]

            mu1_sq = mu1 * mu1
            mu2_sq = mu2 * mu2
            mu1_mu2 = mu1 * mu2
            sigma1_sq = e11 - mu1_sq
            sigma2_sq = e22 - mu2_sq
            sigma12 = e12 - mu1_mu2

            num = (2.0 * mu1_mu2 + C1) * (2.0 * sigma12 + C2)
            den = (mu1_sq + mu2_sq + C1) * (sigma1_sq + sigma2_sq + C2)
            # EUP approx reciprocal + one Newton step (~f32) off the VPU.
            r0 = pl.reciprocal(den, approx=True)
            rcp = r0 * (2.0 - den * r0)
            return num * rcp                  # (H, Wp) ssim_map for this group

        if g_blk == 1:
            acc = one_group(0)
        else:
            acc = lax.fori_loop(0, g_blk, lambda g, acc: acc + one_group(g),
                                jnp.zeros((H, Wp), jnp.float32))

        # Partial-sum slab: tile-aligned VPU adds when shapes allow; the
        # wrapper finishes the (tiny) reduction.
        if fold_rows:
            rows = acc[0:8]
            for i in range(1, H // 8):
                rows = rows + acc[i * 8:(i + 1) * 8]
            if fold_lanes:
                slab = rows[:, 0:128]
                for j in range(1, Wp // 128):
                    slab = slab + rows[:, j * 128:(j + 1) * 128]
            else:
                slab = rows                   # (8, Wp) with Wp <= 128
        else:
            slab = jnp.full((8, slab_w), jnp.sum(acc) * inv_slab, jnp.float32)

        psum_ref[...] = slab.reshape(1, 8, slab_w)

    return kernel


def ssim_loss(img1, img2, window_size=WINDOW_SIZE, size_average=True):
    """Pallas implementation of SSIMLoss.forward (size_average=True)."""
    assert size_average, "size_average=False path not implemented"
    # TODO(synk): size_average=False (per-sample mean) branch not wired up; the
    # module default (True) is what is implemented here.
    B, C, H, W = img1.shape
    BC = B * C
    x1 = img1.reshape(BC, H, W).astype(jnp.float32)
    x2 = img2.reshape(BC, H, W).astype(jnp.float32)
    # TODO(synk): optionally stream bf16 inputs (halves HBM bytes on the
    # mem-bound path) once re-validated against the rtol=1e-4 check.

    # Lane-pack P channels per vreg row (wrapper-side layout plumbing only).
    P = _pick_packing(BC, W)
    G = BC // P
    Wp = P * W
    if P > 1:
        x1p = x1.reshape(G, P, H, W).transpose(0, 2, 1, 3).reshape(G, H, Wp)
        x2p = x2.reshape(G, P, H, W).transpose(0, 2, 1, 3).reshape(G, H, Wp)
    else:
        x1p, x2p = x1, x2

    # Gaussian band matrices (banded Toeplitz == 'same' zero padding), resident
    # in VMEM for the whole grid.
    # TODO(synk): for large images (H or W >~ 512) switch to spatial tiling with
    # an 11-tap halo instead of dense (N, N) Toeplitz matrices (O(N) flops/pixel
    # and O(N^2) VMEM otherwise).
    mw = _banded_blockdiag(W, P, window_size, SIGMA)       # (Wp, Wp)
    mh5 = _banded_blockdiag(H, 5, window_size, SIGMA)      # (5H, 5H)

    vmem_limit, budget = _vmem_budget()
    fixed_bytes = 2 * 4 * (Wp * Wp + 25 * H * H) + 2 * 8 * 128 * 4
    g_blk = _pick_groups_per_block(G, H, Wp, budget, fixed_bytes)
    n_blocks = G // g_blk

    fold_rows = (H % 8 == 0) and (Wp % 128 == 0 or Wp <= 128)
    fold_lanes = (H % 8 == 0) and (Wp % 128 == 0)
    slab_w = 128 if (fold_lanes or not fold_rows) else Wp

    kernel = _make_ssim_kernel(g_blk, H, Wp, slab_w, fold_rows, fold_lanes)

    psums = pl.pallas_call(
        kernel,
        out_shape=jax.ShapeDtypeStruct((n_blocks, 8, slab_w), jnp.float32),
        grid_spec=pltpu.PrefetchScalarGridSpec(
            num_scalar_prefetch=0,
            grid=(n_blocks,),
            in_specs=[
                pl.BlockSpec((Wp, Wp), lambda i: (0, 0)),            # Mw (resident)
                pl.BlockSpec((5 * H, 5 * H), lambda i: (0, 0)),      # Mh5 (resident)
                pl.BlockSpec((g_blk, H, Wp), lambda i: (i, 0, 0)),   # img1 block
                pl.BlockSpec((g_blk, H, Wp), lambda i: (i, 0, 0)),   # img2 block
            ],
            out_specs=pl.BlockSpec((1, 8, slab_w), lambda i: (i, 0, 0)),
        ),
        compiler_params=pltpu.CompilerParams(
            dimension_semantics=("parallel",),       # megacore sharding on v7x
            vmem_limit_bytes=int(vmem_limit),        # generation-aware limit
        ),
    )(mw, mh5, x1p, x2p)

    mean = jnp.sum(psums) / jnp.float32(BC * H * W)
    return (1.0 - mean) * 0.5


def ssim_loss_ref(img1, img2, window_size=WINDOW_SIZE):
    """Pure-JAX reference mirroring the PyTorch module (for validation)."""
    B, C, H, W = img1.shape
    g = jnp.asarray(_gaussian_1d_np(window_size, SIGMA))
    w2d = jnp.outer(g, g)
    window = jnp.broadcast_to(w2d, (C, 1, window_size, window_size))
    pad = window_size // 2

    def conv(x):
        return lax.conv_general_dilated(
            x, window, window_strides=(1, 1),
            padding=[(pad, pad), (pad, pad)],
            dimension_numbers=("NCHW", "OIHW", "NCHW"),
            feature_group_count=C,
            precision=lax.Precision.HIGHEST)

    mu1 = conv(img1)
    mu2 = conv(img2)
    mu1_sq, mu2_sq, mu1_mu2 = mu1 * mu1, mu2 * mu2, mu1 * mu2
    sigma1_sq = conv(img1 * img1) - mu1_sq
    sigma2_sq = conv(img2 * img2) - mu2_sq
    sigma12 = conv(img1 * img2) - mu1_mu2
    ssim_map = ((2 * mu1_mu2 + C1) * (2 * sigma12 + C2)) / (
        (mu1_sq + mu2_sq + C1) * (sigma1_sq + sigma2_sq + C2))
    return (1.0 - jnp.mean(ssim_map)) / 2.0


if __name__ == "__main__":
    key = jax.random.PRNGKey(0)
    k1, k2 = jax.random.split(key)
    B, C, H, W = 2, 4, 16, 16
    img1 = jax.random.uniform(k1, (B, C, H, W), dtype=jnp.float32)
    img2 = jax.random.uniform(k2, (B, C, H, W), dtype=jnp.float32)

    loss = jax.block_until_ready(ssim_loss(img1, img2))
    ref = jax.block_until_ready(ssim_loss_ref(img1, img2))

    assert jnp.isfinite(loss), loss
    assert jnp.allclose(loss, ref, rtol=1e-4, atol=2e-5), (loss, ref)
    print("KERNEL_OK")
</pallas_src>

<mosaic_0001>
module attributes {stable_mosaic.version = 11 : i64} {
  func.func @kernel(%arg0: i32, %arg1: memref<64x64xf32, #tpu.memory_space<vmem>>, %arg2: memref<80x80xf32, #tpu.memory_space<vmem>>, %arg3: memref<1x16x64xf32, #tpu.memory_space<vmem>>, %arg4: memref<1x16x64xf32, #tpu.memory_space<vmem>>, %arg5: memref<1x8x64xf32, #tpu.memory_space<vmem>>) attributes {dimension_semantics = [#tpu.dimension_semantics<parallel>], iteration_bounds = array<i64: 2>, scalar_prefetch = 0 : i64, scratch_operands = 0 : i64, tpu.core_type = #tpu.core_type<tc>, window_params = [{pipeline_mode = #tpu.pipeline_mode<synchronous>, transform_indices = @transform_0, window_bounds = array<i64: 64, 64>}, {pipeline_mode = #tpu.pipeline_mode<synchronous>, transform_indices = @transform_1, window_bounds = array<i64: 80, 80>}, {transform_indices = @transform_2, window_bounds = array<i64: 1, 16, 64>}, {transform_indices = @transform_3, window_bounds = array<i64: 1, 16, 64>}, {transform_indices = @transform_4, window_bounds = array<i64: 1, 8, 64>}]} {
    %c0 = arith.constant 0 : index
    %c0_0 = arith.constant 0 : index
    %0 = vector.load %arg1[%c0, %c0_0] : memref<64x64xf32, #tpu.memory_space<vmem>>, vector<64x64xf32>
    %c0_1 = arith.constant 0 : index
    %c0_2 = arith.constant 0 : index
    %1 = vector.load %arg2[%c0_1, %c0_2] : memref<80x80xf32, #tpu.memory_space<vmem>>, vector<80x80xf32>
    %c0_3 = arith.constant 0 : index
    %c0_4 = arith.constant 0 : index
    %c0_5 = arith.constant 0 : index
    %2 = vector.load %arg3[%c0_3, %c0_4, %c0_5] : memref<1x16x64xf32, #tpu.memory_space<vmem>>, vector<1x16x64xf32>
    %3 = vector.shape_cast %2 : vector<1x16x64xf32> to vector<16x64xf32>
    %c0_6 = arith.constant 0 : index
    %c0_7 = arith.constant 0 : index
    %c0_8 = arith.constant 0 : index
    %4 = vector.load %arg4[%c0_6, %c0_7, %c0_8] : memref<1x16x64xf32, #tpu.memory_space<vmem>>, vector<1x16x64xf32>
    %5 = vector.shape_cast %4 : vector<1x16x64xf32> to vector<16x64xf32>
    %6 = arith.mulf %3, %3 : vector<16x64xf32>
    %7 = arith.mulf %5, %5 : vector<16x64xf32>
    %8 = arith.mulf %3, %5 : vector<16x64xf32>
    %9 = tpu.concatenate %3, %5, %6, %7, %8 in 0 : vector<16x64xf32>, vector<16x64xf32>, vector<16x64xf32>, vector<16x64xf32>, vector<16x64xf32> -> vector<80x64xf32>
    %cst = arith.constant dense<0.000000e+00> : vector<80x64xf32>
    %10 = tpu.matmul %9, %0, %cst {dimension_numbers = #tpu.dot_dimension_numbers<[1], [0], [0], [1], [0, 0, 1, 1], [], []>} : vector<80x64xf32>, vector<64x64xf32>, vector<80x64xf32> -> vector<80x64xf32>
    %cst_9 = arith.constant dense<0.000000e+00> : vector<80x64xf32>
    %11 = tpu.matmul %1, %10, %cst_9 {dimension_numbers = #tpu.dot_dimension_numbers<[1], [0], [0], [1], [0, 0, 1, 1], [], []>} : vector<80x80xf32>, vector<80x64xf32>, vector<80x64xf32> -> vector<80x64xf32>
    %12 = vector.extract_strided_slice %11 {offsets = [0, 0], sizes = [16, 64], strides = [1, 1]} : vector<80x64xf32> to vector<16x64xf32>
    %13 = vector.extract_strided_slice %11 {offsets = [16, 0], sizes = [16, 64], strides = [1, 1]} : vector<80x64xf32> to vector<16x64xf32>
    %14 = vector.extract_strided_slice %11 {offsets = [32, 0], sizes = [16, 64], strides = [1, 1]} : vector<80x64xf32> to vector<16x64xf32>
    %15 = vector.extract_strided_slice %11 {offsets = [48, 0], sizes = [16, 64], strides = [1, 1]} : vector<80x64xf32> to vector<16x64xf32>
    %16 = vector.extract_strided_slice %11 {offsets = [64, 0], sizes = [16, 64], strides = [1, 1]} : vector<80x64xf32> to vector<16x64xf32>
    %17 = arith.mulf %12, %12 : vector<16x64xf32>
    %18 = arith.mulf %13, %13 : vector<16x64xf32>
    %19 = arith.mulf %12, %13 : vector<16x64xf32>
    %20 = arith.subf %14, %17 : vector<16x64xf32>
    %21 = arith.subf %15, %18 : vector<16x64xf32>
    %22 = arith.subf %16, %19 : vector<16x64xf32>
    %cst_10 = arith.constant 2.000000e+00 : f32
    %23 = vector.broadcast %cst_10 : f32 to vector<16x64xf32>
    %24 = arith.mulf %23, %19 : vector<16x64xf32>
    %cst_11 = arith.constant 9.99999974E-5 : f32
    %25 = vector.broadcast %cst_11 : f32 to vector<16x64xf32>
    %26 = arith.addf %24, %25 : vector<16x64xf32>
    %cst_12 = arith.constant 2.000000e+00 : f32
    %27 = vector.broadcast %cst_12 : f32 to vector<16x64xf32>
    %28 = arith.mulf %27, %22 : vector<16x64xf32>
    %cst_13 = arith.constant 8.99999984E-4 : f32
    %29 = vector.broadcast %cst_13 : f32 to vector<16x64xf32>
    %30 = arith.addf %28, %29 : vector<16x64xf32>
    %31 = arith.mulf %26, %30 : vector<16x64xf32>
    %32 = arith.addf %17, %18 : vector<16x64xf32>
    %cst_14 = arith.constant 9.99999974E-5 : f32
    %33 = vector.broadcast %cst_14 : f32 to vector<16x64xf32>
    %34 = arith.addf %32, %33 : vector<16x64xf32>
    %35 = arith.addf %20, %21 : vector<16x64xf32>
    %cst_15 = arith.constant 8.99999984E-4 : f32
    %36 = vector.broadcast %cst_15 : f32 to vector<16x64xf32>
    %37 = arith.addf %35, %36 : vector<16x64xf32>
    %38 = arith.mulf %34, %37 : vector<16x64xf32>
    %39 = tpu.reciprocal %38 {approx = true} : vector<16x64xf32> -> vector<16x64xf32>
    %40 = arith.mulf %38, %39 : vector<16x64xf32>
    %cst_16 = arith.constant 2.000000e+00 : f32
    %41 = vector.broadcast %cst_16 : f32 to vector<16x64xf32>
    %42 = arith.subf %41, %40 : vector<16x64xf32>
    %43 = arith.mulf %39, %42 : vector<16x64xf32>
    %44 = arith.mulf %31, %43 : vector<16x64xf32>
    %45 = vector.extract_strided_slice %44 {offsets = [0, 0], sizes = [8, 64], strides = [1, 1]} : vector<16x64xf32> to vector<8x64xf32>
    %46 = vector.extract_strided_slice %44 {offsets = [8, 0], sizes = [8, 64], strides = [1, 1]} : vector<16x64xf32> to vector<8x64xf32>
    %47 = arith.addf %45, %46 : vector<8x64xf32>
    %48 = vector.shape_cast %47 : vector<8x64xf32> to vector<1x8x64xf32>
    %c0_17 = arith.constant 0 : index
    %c0_18 = arith.constant 0 : index
    %c0_19 = arith.constant 0 : index
    %49 = vector.load %arg5[%c0_17, %c0_18, %c0_19] : memref<1x8x64xf32, #tpu.memory_space<vmem>>, vector<1x8x64xf32>
    tpu.vector_store %arg5[%c0_17, %c0_18, %c0_19], %48 {strides = array<i32>} : memref<1x8x64xf32, #tpu.memory_space<vmem>>, vector<1x8x64xf32>,
    return
  }
  func.func @transform_0(%arg0: i32) -> (i32, i32) {
    %c0_i32 = arith.constant 0 : i32
    %c0_i32_0 = arith.constant 0 : i32
    %c0_i32_1 = arith.constant 0 : i32
    return %c0_i32, %c0_i32_0 : i32, i32
  }
  func.func @transform_1(%arg0: i32) -> (i32, i32) {
    %c0_i32 = arith.constant 0 : i32
    %c0_i32_0 = arith.constant 0 : i32
    %c0_i32_1 = arith.constant 0 : i32
    return %c0_i32, %c0_i32_0 : i32, i32
  }
  func.func @transform_2(%arg0: i32) -> (i32, i32, i32) {
    %c0_i32 = arith.constant 0 : i32
    %c0_i32_0 = arith.constant 0 : i32
    %c0_i32_1 = arith.constant 0 : i32
    return %arg0, %c0_i32, %c0_i32_0 : i32, i32, i32
  }
  func.func @transform_3(%arg0: i32) -> (i32, i32, i32) {
    %c0_i32 = arith.constant 0 : i32
    %c0_i32_0 = arith.constant 0 : i32
    %c0_i32_1 = arith.constant 0 : i32
    return %arg0, %c0_i32, %c0_i32_0 : i32, i32, i32
  }
  func.func @transform_4(%arg0: i32) -> (i32, i32, i32) {
    %c0_i32 = arith.constant 0 : i32
    %c0_i32_0 = arith.constant 0 : i32
    %c0_i32_1 = arith.constant 0 : i32
    return %arg0, %c0_i32, %c0_i32_0 : i32, i32, i32
  }
}

</mosaic_0001>

<bundles_post_ra>
// kernel: tpu_custom_call.1
= control target key start
LH: loop header
LB: loop body
LE: loop exit
PB: predicated region body
PF: predicated region fallthrough
CT: control target
= control target key end

     0   :  { %s1554_s0 = inlined_call_operand.hbm [shape: f32[64,64], index: 0, kind: input, shape index: {}]   ;;  %s1555_s1 = inlined_call_operand.hbm [shape: f32[80,80], index: 1, kind: input, shape index: {}]   ;;  %s1556_s2 = inlined_call_operand.hbm [shape: f32[2,16,64], index: 2, kind: input, shape index: {}]   ;;  %s1557_s3 = inlined_call_operand.hbm [shape: f32[2,16,64], index: 3, kind: input, shape index: {}]   ;;  %s1558_s4 = inlined_call_operand.hbm [shape: f32[2,8,64], index: 4, kind: output, shape index: {}]  }
   0x1   :  { %1571 = sst [smem:[#allocation16_spill]] %s1554_s0 }
   0x2   :  { %1572 = sst [smem:[#allocation17_spill]] %s1556_s2 }
   0x3   :  { %9 = vsyncpa [#allocation3], 0 }
   0x4   :  { %10 = vsyncpa [#allocation6], 0 }
   0x5   :  { %11 = vsyncpa [#allocation4], 0 }
   0x6   :  { %13 = vsyncpa [#allocation4 + $0x1], 0  ;;  %s1252_s15 = smov 0   ;;  %s1254_s16 = smov 0  }
   0x7   :  { %s1256_s17 = smov 0   ;;  %s1258_s18 = smov 0  }
   0x8 LB: > { %1573 = sst [smem:[#allocation14_spill]] %s1214_s17  ;;  %s1273_s19 = sadd.s32 4294967295, %s1218_s18   ;;  %s1218_s18 = sphi %s1258_s18, %s1606_s18   ;;  %s1214_s17 = sphi %s1256_s17, %s1603_s17   ;;  %s1210_s16 = sphi %s1254_s16, %s1605_s16   ;;  %s1206_s15 = sphi %s1252_s15, %s1604_s15  }
   0x9   : > { %s767_s20 = sadd.s32 4294967294, %s1218_s18   ;;  %s1277_s21 = sadd.s32 1, %s1218_s18  }
   0xa   : > { %s68_s22 = sadd.s32 1, %s1214_s17  ;;  %s65_s23 = ssub.s32 %s1218_s18, %s1277_s21 }
   0xb   : > { %p75_p0 = scmp.ne.s32.totalorder %s1214_s17, %s1210_s16  ;;  %p66_p1 = scmp.eq.s32.totalorder %s65_s23, 0 }
   0xc   : > { %p76_p2 = scmp.eq.s32.totalorder %s1218_s18, 0  ;;  %p81_p3 = scmp.ne.s32.totalorder %s1210_s16, %s1206_s15 }
   0xd   : > { %p1559_p4 = scmp.eq.s32.totalorder %s1273_s19, 0  ;;  %p131_p7 = scmp.eq.s32.totalorder %s1273_s19, 1 }
   0xe   : > { %s1289_s24 = scalar_select %p66_p1, %s1214_s17, %s68_s22  }
   0xf   : > { %p1291_p5 = por %p76_p2, %p75_p0  ;;  %p1297_p6 = por %p1559_p4, %p81_p3 }
  0x10   : > { %1574 = sst [smem:[#allocation15_spill]] %s1289_s24  ;;  %p137_p8 = scmp.eq.s32.totalorder %s767_s20, 1 }
  0x11   : > { %s1575_s25 = scalar_select %p1291_p5, 1, 0 }
  0x12   : > { %s1576_s26 = scalar_select %p1297_p6, 1, 0 }
  0x13   : > { %p768_p9 = scmp.ge.s32.totalorder %s1218_s18, 1  ;;  %p144_p10 = scmp.lt.s32.totalorder %s1218_s18, 3 }
  0x14   : > { %p1304_p11 = por %p131_p7, %p75_p0  ;;  %p1308_p12 = por %p137_p8, %p81_p3 }
  0x15   : > { %p1312_p13 = pnand %p768_p9, %p144_p10  ;;  %s1220_s30 = smov [#allocation2]  }
  0x16   : > { %s1577_s27 = scalar_select %p1304_p11, 1, 0 }
  0x17   : > { %s1578_s28 = scalar_select %p1308_p12, 1, 0 }
  0x18   : > { %s1579_s29 = scalar_select %p1312_p13, 1, 0 }
  0x19   : > { %p964_p1 = pneg %p1312_p13  ;;  %s156_s5 = sshll.u32 %s1220_s30, 4  ;;  %s157_s5 = int_to_ptr.vmem [resolvable:$true] %s156_s5 }
  0x1a   : > { %s183_s7 = sand.u32 1, %s1218_s18   ;;  %s1581_s0 = sld [smem:[#allocation16_spill]] }
  0x1b   : > { %p1320_p2 = pnand %p964_p1, %p1559_p4 }
  0x1d   : > { %p1566_p8 = pneg %p1320_p2 }
  0x20   : > { %s1028_s10 = scalar_lea.hbm %s1581_s0, 1024 }
  0x21   : > { %p1029_p7 = scmp.ne.s32.totalorder %s1581_s0, %s1028_s10  ;;  %p1035_p1 = scmp.lt.u32.totalorder %s1028_s10, %s1581_s0 }
  0x23   : > { %p1031_p9 = pnand %p1566_p8, %p1029_p7 }
  0x25   : > { %p1032_p10 = pneg %p1031_p9 }
  0x27   : > { %p1037_p0 = pnand %p1035_p1, %p1032_p10 }
  0x29   : > { %1040 = shalt.err (!%p1037_p0)
}
  0x2a   : > { %s1041_s20 = scalar_lea.vmem %s157_s5, 1024  ;;  %p1049_p11 = scmp.lt.s32.totalorder %s157_s5, %s157_s5 }
  0x2b   : > { %p1042_p4 = scmp.ne.s32.totalorder %s157_s5, %s1041_s20  ;;  %p1050_p6 = scmp.lt.s32.totalorder %s1041_s20, %s1041_s20 }
  0x2d   : > { %p1044_p3 = pnand %p1042_p4, %p1566_p8  ;;  %p1051_p13 = por %p1050_p6, %p1049_p11 }
  0x2f   : > { %p1045_p12 = pneg %p1044_p3 }
  0x31   : > { %p1052_p5 = pnand %p1051_p13, %p1045_p12 }
  0x33   : > { %1055 = shalt.err (!%p1052_p5)
}
  0x34   : > { %s1564_s22 = smov 128   ;;  %s1222_s23 = smov 8  }
  0x35   : > { %967 = dma.hbm_to_vmem [thread:$0]  (!%p1320_p2), %s1581_s0, 1024, %s157_s5, [#allocation3], %s1564_s22, %s1564_s22, %s1222_s23  }
  0x36   : > { %p1582_p4 = scmp.ne.s32.totalorder %s1575_s25, 0  ;;  %p1583_p6 = scmp.lt.s32.totalorder %s1218_s18, 2 }
  0x37   : > { %s185_s10 = sand.u32 1, %s1214_s17   ;;  %s1563_s12 = sshll.u32 %s1218_s18, 8 }
  0x38   : > { %p1356_p11 = pnand %p1583_p6, %p1582_p4  ;;  %s1361_s11 = sshll.u32 %s185_s10, 4 }
  0x39   : > { %s1585_s2 = sld [smem:[#allocation17_spill]]  ;;  %s187_s25 = scalar_lea.vmem [#allocation7], %s1361_s11 }
  0x3a   : > { %s1584_s9 = scalar_select %p1356_p11, 1, 0 }
  0x3b   : > { %s194_s5 = sshll.u32 %s187_s25, 4  ;;  %s1374_s30 = scalar_lea.sflag [#allocation3], %s183_s7  ;;  %s1372_s5 = int_to_ptr.vmem [resolvable:$true] %s194_s5 }
  0x3c   : > { %p1568_p12 = pneg %p1356_p11 }
  0x3f   : > { %s1369_s20 = scalar_lea.hbm %s1585_s2, %s1563_s12  ;;  %s1061_s14 = scalar_lea.hbm %s1585_s2, 512 }
  0x40   : > { %s1056_s8 = scalar_lea.hbm %s1369_s20, 256  ;;  %p1062_p3 = scmp.lt.u32.totalorder %s1369_s20, %s1585_s2 }
  0x41   : > { %p1057_p5 = scmp.ne.s32.totalorder %s1369_s20, %s1056_s8  ;;  %p1063_p7 = scmp.lt.u32.totalorder %s1061_s14, %s1056_s8 }
  0x42   : > { %p1065_p10 = scmp.lt.u32.totalorder %s1056_s8, %s1369_s20 }
  0x43   : > { %p1059_p13 = pnand %p1568_p12, %p1057_p5  ;;  %p1064_p9 = por %p1063_p7, %p1062_p3 }
  0x45   : > { %p1060_p0 = pneg %p1059_p13  ;;  %p1066_p1 = por %p1065_p10, %p1064_p9 }
  0x47   : > { %p1067_p4 = pnand %p1066_p1, %p1060_p0 }
  0x49   : > { %1070 = shalt.err (!%p1067_p4)
}
  0x4a   : > { %s1071_s7 = scalar_lea.vmem %s1372_s5, 256  ;;  %s1223_s25 = smov [#allocation7]  }
  0x4b   : > { %p1072_p6 = scmp.ne.s32.totalorder %s1372_s5, %s1071_s7  ;;  %s1076_s10 = sshll.u32 %s1223_s25, 4  ;;  %s1077_s10 = int_to_ptr.vmem [resolvable:$false] %s1076_s10 }
  0x4c   : > { %s1078_s22 = scalar_lea.vmem %s1077_s10, 512  ;;  %p1079_p8 = scmp.lt.s32.totalorder %s1372_s5, %s1077_s10 }
  0x4d   : > { %p1074_p5 = pnand %p1072_p6, %p1568_p12  ;;  %p1080_p3 = scmp.lt.s32.totalorder %s1078_s22, %s1071_s7 }
  0x4f   : > { %p1075_p13 = pneg %p1074_p5  ;;  %p1081_p7 = por %p1080_p3, %p1079_p8 }
  0x51   : > { %p1082_p9 = pnand %p1081_p7, %p1075_p13 }
  0x53   : > { %1085 = shalt.err (!%p1082_p9)
}
  0x54   : > { %s1586_s12 = smov 128   ;;  %s1224_s8 = smov [#allocation5]  }
  0x55   : > { %974 = dma.hbm_to_vmem [thread:$0]  (!%p1356_p11), %s1369_s20, 256, %s1372_s5, %s1374_s30, %s1586_s12, %s1586_s12, %s1222_s23  }
  0x56   : > { %s169_s13 = sshll.u32 %s1224_s8, 4  ;;  %s1587_s14 = sshll.u32 %s1218_s18, 8  ;;  %s170_s13 = int_to_ptr.vmem [resolvable:$true] %s169_s13 }
  0x57   : > { %s1410_s10 = scalar_lea.hbm %s1557_s3, %s1587_s14  ;;  %s1086_s2 = scalar_lea.hbm %s1555_s1, 1280 }
  0x58   : > { %p1087_p8 = scmp.ne.s32.totalorder %s1555_s1, %s1086_s2  ;;  %p1588_p0 = pneg %p1320_p2 }
  0x59   : > { %p1093_p4 = scmp.lt.u32.totalorder %s1086_s2, %s1555_s1 }
  0x5a   : > { %p1089_p10 = pnand %p1087_p8, %p1588_p0 }
  0x5c   : > { %p1090_p1 = pneg %p1089_p10 }
  0x5e   : > { %p1095_p6 = pnand %p1093_p4, %p1090_p1 }
  0x60   : > { %1098 = shalt.err (!%p1095_p6)
}
  0x61   : > { %s1099_s8 = scalar_lea.vmem %s170_s13, 1280  ;;  %p1589_p13 = pmov %p1588_p0 }
  0x62   : > { %p1100_p5 = scmp.ne.s32.totalorder %s170_s13, %s1099_s8  ;;  %p1107_p9 = scmp.lt.s32.totalorder %s170_s13, %s170_s13 }
  0x63   : > { %p1108_p12 = scmp.lt.s32.totalorder %s1099_s8, %s1099_s8 }
  0x64   : > { %p1102_p3 = pnand %p1100_p5, %p1589_p13 }
  0x65   : > { %p1109_p11 = por %p1108_p12, %p1107_p9 }
  0x66   : > { %p1103_p7 = pneg %p1102_p3 }
  0x68   : > { %p1110_p0 = pnand %p1109_p11, %p1103_p7 }
  0x6a   : > { %1113 = shalt.err (!%p1110_p0)
}
  0x6b   : > { %970 = dma.hbm_to_vmem [thread:$0]  (!%p1320_p2), %s1555_s1, 1280, %s170_s13, [#allocation6], %s1586_s12, %s1586_s12, %s1222_s23  }
  0x6c   : > { %s208_s17 = scalar_lea.vmem [#allocation8], %s1361_s11  ;;  %s1114_s14 = scalar_lea.hbm %s1410_s10, 256 }
  0x6d   : > { %s215_s24 = sshll.u32 %s208_s17, 4  ;;  %p1115_p11 = scmp.ne.s32.totalorder %s1410_s10, %s1114_s14  ;;  %s1436_s24 = int_to_ptr.vmem [resolvable:$true] %s215_s24 }
  0x6e   : > { %p1590_p12 = scmp.ne.s32.totalorder %s1584_s9, 0  ;;  %s1119_s7 = scalar_lea.hbm %s1557_s3, 512 }
  0x6f   : > { %p1120_p4 = scmp.lt.u32.totalorder %s1410_s10, %s1557_s3  ;;  %p1121_p6 = scmp.lt.u32.totalorder %s1119_s7, %s1114_s14 }
  0x70   : > { %p1591_p8 = pneg %p1590_p12  ;;  %p1123_p5 = scmp.lt.u32.totalorder %s1114_s14, %s1410_s10 }
  0x71   : > { %p1122_p2 = por %p1121_p6, %p1120_p4 }
  0x72   : > { %p1117_p10 = pnand %p1115_p11, %p1591_p8 }
  0x73   : > { %p1124_p13 = por %p1123_p5, %p1122_p2 }
  0x74   : > { %p1118_p1 = pneg %p1117_p10 }
  0x76   : > { %p1125_p3 = pnand %p1124_p13, %p1118_p1 }
  0x78   : > { %1128 = shalt.err (!%p1125_p3)
}
  0x79   : > { %s1129_s11 = scalar_lea.vmem %s1436_s24, 256  ;;  %p1592_p9 = pmov %p1591_p8 }
  0x7a   : > { %p1130_p7 = scmp.ne.s32.totalorder %s1436_s24, %s1129_s11  ;;  %s1225_s13 = smov [#allocation8]  }
  0x7b   : > { %s1134_s5 = sshll.u32 %s1225_s13, 4  ;;  %s1135_s5 = int_to_ptr.vmem [resolvable:$false] %s1134_s5 }
  0x7c   : > { %p1132_p0 = pnand %p1130_p7, %p1592_p9  ;;  %s1136_s8 = scalar_lea.vmem %s1135_s5, 512 }
  0x7d   : > { %p1137_p8 = scmp.lt.s32.totalorder %s1436_s24, %s1135_s5  ;;  %p1138_p10 = scmp.lt.s32.totalorder %s1136_s8, %s1129_s11 }
  0x7e   : > { %p1133_p11 = pneg %p1132_p0 }
  0x7f   : > { %p1139_p4 = por %p1138_p10, %p1137_p8 }
  0x81   : > { %p1140_p6 = pnand %p1139_p4, %p1133_p11 }
  0x83   : > { %1143 = shalt.err (!%p1140_p6)
}
  0x84   : > { %977 = dma.hbm_to_vmem [thread:$0]  (!%p1590_p12), %s1410_s10, 256, %s1436_s24, %s1374_s30, %s1586_s12, %s1586_s12, %s1222_s23  }
  0x85   : > { %p1593_p1 = scmp.ne.s32.totalorder %s1579_s29, 0 }
  0x86   : > { %p1594_p2 = scmp.eq.s32.totalorder (!%p1593_p1), %s1273_s19, 0 }
  0x87   : > { %227 = sbr.rel (%p1593_p1) target bundleno = 673 (0x2a1), region = 36 }
  0x8e   : > { %1189 = dma.done.wait (%p1594_p2), [#allocation3], 1024   ;;  %p1595_p5 = pmov %p1594_p2 }
  0x8f   : > { %p1596_p13 = pmov %p1594_p2 }
  0x90   : > { %1191 = vsyncadd (%p1595_p5), [#allocation3], 4294966272 }
  0x91   : > { %1193 = dma.done.wait (%p1596_p13), [#allocation6], 1280   ;;  %p1597_p3 = pmov %p1594_p2 }
  0x92   : > { %s237_s9 = sand.u32 1, %s1273_s19   ;;  %s1477_s23 = sand.u32 1, %s1210_s16  }
  0x93   : > { %1195 = vsyncadd (%p1597_p3), [#allocation6], 4294966016  ;;  %s781_s29 = sshll.u32 %s1477_s23, 4  ;;  %s238_s30 = scalar_lea.sflag [#allocation3], %s237_s9 }
  0x94   : > { %s241_s12 = scalar_lea.vmem [#allocation7], %s781_s29  ;;  %p1598_p12 = scmp.ne.s32.totalorder %s1576_s26, 0 }
  0x96   : > { %1197 = dma.done.wait (%p1598_p12), %s238_s30, 512  }
  0x97   : > { %1199 = vsyncadd (%p1598_p12), %s238_s30, 4294966784  ;;  %v280_v0 = vld [vmem:[#allocation2] sm:$0xff]  ;;  %v281_v1 = vld [vmem:[#allocation2 + $0x8] sm:$0xff]  ;;  %vm308_vm0 = vcmask 523264   ;;  %s250_s26 = scalar_lea.vmem [#allocation8], %s781_s29  ;;  %vm454_vm1 = vcmask 654336  }
  0x98   : > { %v282_v2 = vld [vmem:[#allocation2 + $0x10] sm:$0xff]  ;;  %v914_v3 = vpack.c.bf16 %v281_v1, %v280_v0  ;;  %v283_v4 = vld [vmem:[#allocation2 + $0x18] sm:$0xff]  ;;  %v284_v6 = vld [vmem:[#allocation2 + $0x20] sm:$0xff]  ;;  %s783_s10 = sshll.u32 %s1477_s23, 3  ;;  %s805_s0 = sshll.u32 %s1273_s19, 7 }
  0x99   : > { %v918_v5 = vpack.c.bf16 %v283_v4, %v282_v2  ;;  %v285_v7 = vld [vmem:[#allocation2 + $0x28] sm:$0xff]  ;;  %v298_v8 = vld [vmem:[%s241_s12] sm:$0xff]  ;;  %v287_v11 = vld [vmem:[#allocation2 + $0x38] sm:$0xff]  ;;  %s279_s2 = scalar_lea.vmem [#allocation9], %s783_s10  ;;  %s1509_s6 = scalar_lea.hbm %s1558_s4, %s805_s0 }
  0x9a   : > { %915 = vmatprep.subr.bf16.mxu0 %v914_v3  ;;  %864 = vmatprep.mubr.msk.f32.mxu0 %vm308_vm0, %v298_v8  ;;  %v922_v9 = vpack.c.bf16 %v285_v7, %v284_v6  ;;  %v286_v10 = vld [vmem:[#allocation2 + $0x30] sm:$0xff]  ;;  %v299_v13 = vld [vmem:[%s241_s12 + $0x8] sm:$0xff]  ;;  %v302_v15 = vmul.f32 %v298_v8, %v298_v8  ;;  %v288_v22 = vld [vmem:[#allocation5] sm:$0xff]  ;;  %s658_s17 = sshll.u32 %s279_s2, 4  ;;  %s645_s25 = scalar_lea.sflag [#allocation4], %s1477_s23  ;;  %s1511_s17 = int_to_ptr.vmem [resolvable:$true] %s658_s17 }
  0x9b   : > { %917 = vmatpush3.bf16.msra.mxu0 %v914_v3  ;;  %v926_v12 = vpack.c.bf16 %v287_v11, %v286_v10  ;;  %v300_v14 = vld [vmem:[%s250_s26] sm:$0xff]  ;;  %v301_v16 = vld [vmem:[%s250_s26 + $0x8] sm:$0xff]  ;;  %v303_v17 = vmul.f32 %v299_v13, %v299_v13  ;;  %899 = vmatprep.mubr.msk.f32.mxu1 %vm454_vm1, %v288_v22  ;;  %s1144_s7 = scalar_lea.vmem %s1511_s17, 128  ;;  %p1599_p9 = scmp.ne.s32.totalorder %s1577_s27, 0 }
  0x9c   : > { %919 = vmatprep.subr.bf16.mxu0 %v918_v5  ;;  %v304_v18 = vmul.f32 %v300_v14, %v300_v14  ;;  %v305_v19 = vmul.f32 %v301_v16, %v301_v16  ;;  %v306_v20 = vmul.f32 %v300_v14, %v298_v8  ;;  %v307_v21 = vmul.f32 %v301_v16, %v299_v13  ;;  %v289_v38 = vld [vmem:[#allocation5 + $0x8] sm:$0xff]  ;;  %v290_v39 = vld [vmem:[#allocation5 + $0x10] sm:$0xff]  ;;  %v291_v40 = vld [vmem:[#allocation5 + $0x18] sm:$0xff]  ;;  %p1145_p7 = scmp.ne.s32.totalorder %s1511_s17, %s1144_s7  ;;  %s1226_s19 = smov [#allocation9]  }
  0x9d   : > { %v292_v41 = vld [vmem:[#allocation5 + $0x20] sm:$0xff]  ;;  %v293_v42 = vld [vmem:[#allocation5 + $0x28] sm:$0xff]  ;;  %v294_v43 = vld [vmem:[#allocation5 + $0x30] sm:$0xff]  ;;  %s1148_s22 = sshll.u32 %s1226_s19, 4  ;;  %s1149_s22 = int_to_ptr.vmem [resolvable:$false] %s1148_s22 }
  0x9e   : > { %v295_v44 = vld [vmem:[#allocation5 + $0x38] sm:$0xff]  ;;  %v296_v45 = vld [vmem:[#allocation5 + $0x40] sm:$0xff]  ;;  %v297_v46 = vld [vmem:[#allocation5 + $0x48] sm:$0xff]  ;;  %p1146_p0 = pnand %p1145_p7, %p1599_p9  ;;  %s1150_s20 = scalar_lea.vmem %s1149_s22, 256 }
  0x9f   : > { %921 = vmatpush3.bf16.msra.mxu0 %v918_v5  ;;  %p1151_p8 = scmp.lt.s32.totalorder %s1511_s17, %s1149_s22  ;;  %p1152_p10 = scmp.lt.s32.totalorder %s1150_s20, %s1144_s7 }
  0xa0   : > { %923 = vmatprep.subr.bf16.mxu0 %v922_v9  ;;  %p1147_p11 = pneg %p1146_p0 }
  0xa1   : > { %p1153_p4 = por %p1152_p10, %p1151_p8 }
  0xa3   : > { %925 = vmatpush3.bf16.msra.mxu0 %v922_v9  ;;  %p1154_p6 = pnand %p1153_p4, %p1147_p11 }
  0xa4   : > { %927 = vmatprep.subr.bf16.mxu0 %v926_v12 }
  0xa7   : > { %929 = vmatpush3.bf16.msra.mxu0 %v926_v12 }
  0xaa   : > { %865 = vmatmul.mubr.msk.f32.vlgmr.msra.gmra.mrb[0].mxu0 %vm308_vm0, %v299_v13 }
  0xab   : > { %867 = vmatprep.mubr.msk.f32.mxu0 %vm308_vm0, %v300_v14 }
  0xae   : > { %868 = vmatmul.mubr.msk.f32.gmra.mrb[2].mxu0 %vm308_vm0, %v301_v16 }
  0xaf   : > { %870 = vmatprep.mubr.msk.f32.mxu0 %vm308_vm0, %v302_v15 }
  0xb2   : > { %871 = vmatmul.mubr.msk.f32.gmra.mrb[4].mxu0 %vm308_vm0, %v303_v17 }
  0xb3   : > { %873 = vmatprep.mubr.msk.f32.mxu0 %vm308_vm0, %v304_v18 }
  0xb6   : > { %874 = vmatmul.mubr.msk.f32.gmra.mrb[6].mxu0 %vm308_vm0, %v305_v19 }
  0xb7   : > { %876 = vmatprep.mubr.msk.f32.mxu0 %vm308_vm0, %v306_v20 }
  0xba   : > { %877 = vmatmul.mubr.msk.f32.gmra.mrb[8].mxu0 %vm308_vm0, %v307_v21 }
 0x17d   : > { %v866_v23 = vpop.f32.mrb[0].mxu0 }
 0x17e   : > { %v405_v24 = vpop.f32.mrb[1].mxu0 }
 0x17f   : > { %v930_v25 = vpack.c.bf16 %v866_v23, %v405_v24 }
 0x181   : > { %v869_v26 = vpop.f32.mrb[2].mxu0  ;;  %931 = vmatprep.subr.bf16.mxu1 %v930_v25 }
 0x182   : > { %v415_v27 = vpop.f32.mrb[3].mxu0  ;;  %933 = vmatpush3.bf16.msra.mxu1 %v930_v25 }
 0x183   : > { %v934_v28 = vpack.c.bf16 %v869_v26, %v415_v27 }
 0x185   : > { %v872_v29 = vpop.f32.mrb[4].mxu0  ;;  %935 = vmatprep.subr.bf16.mxu1 %v934_v28 }
 0x186   : > { %v425_v30 = vpop.f32.mrb[5].mxu0  ;;  %937 = vmatpush3.bf16.msra.mxu1 %v934_v28 }
 0x187   : > { %v938_v31 = vpack.c.bf16 %v872_v29, %v425_v30 }
 0x189   : > { %v875_v32 = vpop.f32.mrb[6].mxu0  ;;  %939 = vmatprep.subr.bf16.mxu1 %v938_v31 }
 0x18a   : > { %v435_v33 = vpop.f32.mrb[7].mxu0  ;;  %941 = vmatpush3.bf16.msra.mxu1 %v938_v31 }
 0x18b   : > { %v942_v34 = vpack.c.bf16 %v875_v32, %v435_v33 }
 0x18d   : > { %v878_v35 = vpop.f32.mrb[8].mxu0  ;;  %943 = vmatprep.subr.bf16.mxu1 %v942_v34 }
 0x18e   : > { %v445_v36 = vpop.f32.mrb[9].mxu0  ;;  %945 = vmatpush3.bf16.msra.mxu1 %v942_v34 }
 0x18f   : > { %v946_v37 = vpack.c.bf16 %v878_v35, %v445_v36 }
 0x191   : > { %947 = vmatprep.subr.bf16.mxu1 %v946_v37 }
 0x192   : > { %949 = vmatpush3.bf16.msra.mxu1 %v946_v37 }
 0x195   : > { %900 = vmatmul.mubr.msk.f32.vlgmr.msra.gmra.mrb[0].mxu1 %vm454_vm1, %v289_v38 }
 0x196   : > { %902 = vmatprep.mubr.msk.f32.mxu1 %vm454_vm1, %v290_v39 }
 0x199   : > { %903 = vmatmul.mubr.msk.f32.gmra.mrb[2].mxu1 %vm454_vm1, %v291_v40 }
 0x19a   : > { %905 = vmatprep.mubr.msk.f32.mxu1 %vm454_vm1, %v292_v41 }
 0x19d   : > { %906 = vmatmul.mubr.msk.f32.gmra.mrb[4].mxu1 %vm454_vm1, %v293_v42 }
 0x19e   : > { %908 = vmatprep.mubr.msk.f32.mxu1 %vm454_vm1, %v294_v43 }
 0x1a1   : > { %909 = vmatmul.mubr.msk.f32.gmra.mrb[6].mxu1 %vm454_vm1, %v295_v44 }
 0x1a2   : > { %911 = vmatprep.mubr.msk.f32.mxu1 %vm454_vm1, %v296_v45 }
 0x1a5   : > { %912 = vmatmul.mubr.msk.f32.gmra.mrb[8].mxu1 %vm454_vm1, %v297_v46 }
 0x268   : > { %v901_v47 = vpop.f32.mrb[0].mxu1 }
 0x269   : > { %v551_v48 = vpop.f32.mrb[1].mxu1  ;;  %v601_v50 = vmul.f32 %v901_v47, %v901_v47 }
 0x26a   : > { %v600_v54 = vmul.f32 %v551_v48, %v551_v48 }
 0x26c   : > { %v904_v49 = vpop.f32.mrb[2].mxu1 }
 0x26d   : > { %v603_v51 = vmul.f32 %v904_v49, %v904_v49  ;;  %v605_v52 = vmul.f32 %v904_v49, %v901_v47  ;;  %v561_v53 = vpop.f32.mrb[3].mxu1 }
 0x26e   : > { %v602_v55 = vmul.f32 %v561_v53, %v561_v53  ;;  %v604_v56 = vmul.f32 %v561_v53, %v551_v48 }
 0x26f   : > { %v623_v57 = vadd.f32 %v603_v51, %v601_v50  ;;  %v613_v6 = vmul.f32 2.0, %v605_v52 }
 0x270   : > { %v622_v58 = vadd.f32 %v602_v55, %v600_v54  ;;  %v907_v59 = vpop.f32.mrb[4].mxu1  ;;  %v612_v11 = vmul.f32 2.0, %v604_v56 }
 0x271   : > { %v607_v60 = vsub.f32 %v907_v59, %v601_v50  ;;  %v571_v61 = vpop.f32.mrb[5].mxu1  ;;  %v625_v7 = vadd.f32 0.0001, %v623_v57  ;;  %v615_v19 = vadd.f32 0.0001, %v613_v6 }
 0x272   : > { %v606_v62 = vsub.f32 %v571_v61, %v600_v54  ;;  %v624_v12 = vadd.f32 0.0001, %v622_v58  ;;  %v614_v21 = vadd.f32 0.0001, %v612_v11 }
 0x274   : > { %v910_v63 = vpop.f32.mrb[6].mxu1 }
 0x275   : > { %v609_v0 = vsub.f32 %v910_v63, %v603_v51  ;;  %v581_v1 = vpop.f32.mrb[7].mxu1 }
 0x276   : > { %v608_v2 = vsub.f32 %v581_v1, %v602_v55 }
 0x277   : > { %v627_v3 = vadd.f32 %v609_v0, %v607_v60 }
 0x278   : > { %v626_v4 = vadd.f32 %v608_v2, %v606_v62  ;;  %v913_v5 = vpop.f32.mrb[8].mxu1 }
 0x279   : > { %v629_v8 = vadd.f32 0.0009, %v627_v3  ;;  %v611_v9 = vsub.f32 %v913_v5, %v605_v52  ;;  %v591_v10 = vpop.f32.mrb[9].mxu1 }
 0x27a   : > { %v628_v13 = vadd.f32 0.0009, %v626_v4  ;;  %v610_v14 = vsub.f32 %v591_v10, %v604_v56 }
 0x27b   : > { %v631_v15 = vmul.f32 %v629_v8, %v625_v7  ;;  %v617_v16 = vmul.f32 2.0, %v611_v9 }
 0x27c   : > { %v630_v17 = vmul.f32 %v628_v13, %v624_v12  ;;  %v616_v18 = vmul.f32 2.0, %v610_v14 }
 0x27d   : > { %1024 = vrcp.f32 %v631_v15  ;;  %v619_v20 = vadd.f32 0.0009, %v617_v16 }
 0x27e   : > { %1026 = vrcp.f32 %v630_v17  ;;  %v618_v22 = vadd.f32 0.0009, %v616_v18 }
 0x27f   : > { %v621_v23 = vmul.f32 %v619_v20, %v615_v19 }
 0x280   : > { %v620_v24 = vmul.f32 %v618_v22, %v614_v21 }
 0x287   : > { %v1025_v25 = vpop.eup %1024 }
 0x288   : > { %v1027_v26 = vpop.eup %1026  ;;  %v635_v27 = vmul.f32 %v1025_v25, %v631_v15 }
 0x289   : > { %v634_v28 = vmul.f32 %v1027_v26, %v630_v17 }
 0x28a   : > { %v637_v29 = vsub.f32 2.0, %v635_v27 }
 0x28b   : > { %v636_v30 = vsub.f32 2.0, %v634_v28 }
 0x28c   : > { %v639_v31 = vmul.f32 %v1025_v25, %v637_v29 }
 0x28d   : > { %v638_v32 = vmul.f32 %v1027_v26, %v636_v30 }
 0x28e   : > { %v641_v33 = vmul.f32 %v639_v31, %v621_v23 }
 0x28f   : > { %v640_v34 = vmul.f32 %v638_v32, %v620_v24 }
 0x291   : > { %v642_v35 = vadd.f32 %v641_v33, %v640_v34 }
 0x293   : > { %643 = vst.msk [vmem:[%s279_s2] sm:$0xff] %vm308_vm0, %v642_v35 }
 0x294   : > { %1157 = shalt.err (!%p1154_p6)
}
 0x295   : > { %s1158_s11 = scalar_lea.hbm %s1509_s6, 128  ;;  %s1162_s8 = scalar_lea.hbm %s1558_s4, 256 }
 0x296   : > { %p1159_p1 = scmp.ne.s32.totalorder %s1509_s6, %s1158_s11  ;;  %p1163_p13 = scmp.lt.u32.totalorder %s1509_s6, %s1558_s4 }
 0x297   : > { %p1164_p3 = scmp.lt.u32.totalorder %s1162_s8, %s1158_s11  ;;  %p1166_p7 = scmp.lt.u32.totalorder %s1158_s11, %s1509_s6 }
 0x298   : > { %p1160_p2 = pnand %p1159_p1, %p1599_p9 }
 0x299   : > { %p1165_p12 = por %p1164_p3, %p1163_p13 }
 0x29a   : > { %p1161_p5 = pneg %p1160_p2 }
 0x29b   : > { %p1167_p0 = por %p1166_p7, %p1165_p12 }
 0x29d   : > { %p1168_p11 = pnand %p1167_p0, %p1161_p5 }
 0x29f   : > { %1171 = shalt.err (!%p1168_p11)
}
 0x2a0   : > { %962 = dma.vmem_to_hbm [thread:$0]  (%p1599_p9), %s1511_s17, 128, %s1509_s6, %s645_s25  }
 0x2a1 PF: > { %s670_s29 = sand.u32 1, %s1206_s15   ;;  %p1600_p8 = scmp.ne.s32.totalorder %s1578_s28, 0 }
 0x2a2   : > { %p1601_p10 = scmp.ge.s32.totalorder %s1218_s18, 2  ;;  %s671_s30 = scalar_lea.sflag [#allocation4], %s670_s29 }
 0x2a4   : > { %p979_p4 = pnand %p1601_p10, %p1600_p8 }
 0x2a6   : > { %1201 = dma.done.wait (!%p979_p4), %s671_s30, 128  }
 0x2a7   : > { %1203 = vsyncadd (!%p979_p4), %s671_s30, 4294967168  ;;  %s1602_s12 = sld [smem:[#allocation14_spill]]  ;;  %s1603_s17 = sld [smem:[#allocation15_spill]] }
 0x2a8   : > { %p16_p6 = scmp.ge.s32.totalorder %s1277_s21, 4   ;;  %s1604_s15 = smov %s1210_s16 }
 0x2a9   : > { %s1606_s18 = smov %s1277_s21 }
 0x2aa   :  { %18 = sbr.rel (!%p16_p6) target bundleno = 8 (0x8), region = 99 }
 0x2ad   : > { %s1605_s16 = smov %s1602_s12 }
 0x2b1   :  { %676 = vsyncpa [#allocation3], 1 }
 0x2b2   :  { %678 = vsyncpa [#allocation3 + $0x1], 1 }
 0x2b3   :  { %679 = vsyncpa [#allocation6], 1 }
 0x2b4   :  { %680 = vsyncpa [#allocation4], 1 }
 0x2b5   :  { %682 = vsyncpa [#allocation4 + $0x1], 1 }

</bundles_post_ra>
